<compile_context>
chip_gen: v7x
topology: tpu7x:2x2x1
jax: 0.10.0
libtpu: 0.0.40
codegen_flags: <defaults>
</compile_context>

<pallas_src>
import jax
import jax.numpy as jnp
from jax.experimental import pallas as pl
from jax.experimental.pallas import tpu as pltpu


def _lstm_kernel(x_ref, h0_ref, c0_ref, wih_ref, whh_ref, b_ref,
                 h_all_ref, hT_ref, cT_ref, xw_scr):
    """x_ref: (T*B, F) time-major flattened input.  h0/c0: (B, H).
       wih_ref: (F, 4H), whh_ref: (H, 4H), b_ref: (1, 4H) = b_ih + b_hh.
       Outputs: h_all (T*B, H) hidden states of every step, hT/cT (B, H).
       xw_scr: (T*B, 4H) VMEM scratch holding the precomputed input projection."""
    B, H = h0_ref.shape
    T = x_ref.shape[0] // B

    # ---- prologue (runs once) ------------------------------------------------
    # One big MXU matmul for the input projection of every timestep; bias is
    # folded in here so its broadcast happens once, outside the recurrence.
    xw_scr[...] = (jnp.dot(x_ref[...], wih_ref[...],
                           preferred_element_type=jnp.float32)
                   + b_ref[...])

    whh = whh_ref[...]                     # (H, 4H); loaded once, stays resident.
    # TODO(synk): for large H on v6e/v7x, cast the matmul operands to bfloat16
    # (keep preferred_element_type=f32 and all elementwise gate math in f32;
    # on v5e keep everything f32 since its VPU/EUP have no bf16).

    # ---- recurrence ------------------------------------------------------------
    def step(t, carry):
        h, c = carry
        row = pl.multiple_of(t * B, B)     # sublane-aligned start row of step t
        # Single recurrent matmul per step; x-projection + bias precomputed above.
        gates = xw_scr[pl.ds(row, B), :] + jnp.dot(
            h, whh, preferred_element_type=jnp.float32)        # (B, 4H)

        # Two full-width EUP calls instead of four narrow sub-vreg ones.
        sig = jax.nn.sigmoid(gates)
        th = jnp.tanh(gates)
        i_g = sig[:, 0 * H:1 * H]
        f_g = sig[:, 1 * H:2 * H]
        g_g = th[:, 2 * H:3 * H]
        o_g = sig[:, 3 * H:4 * H]

        c_new = f_g * c + i_g * g_g
        h_new = o_g * jnp.tanh(c_new)

        h_all_ref[pl.ds(row, B), :] = h_new   # lane-dense (B, H) store per step
        return h_new, c_new

    # Fully unrolled: short fixed trip count -> LLO sees across timesteps.
    hT, cT = jax.lax.fori_loop(0, T, step, (h0_ref[...], c0_ref[...]),
                               unroll=True)

    # ---- epilogue (runs once) --------------------------------------------------
    hT_ref[...] = hT
    cT_ref[...] = cT


def lstm_forward(x, h0, c0, w_ih, w_hh, b_ih, b_hh, w_out, b_out):
    """x: (B, T, F) float32 (batch_first, like the PyTorch module).
       h0, c0: (1, B, H).  Returns (y, (hT, cT)) with y: (B, T, 1), hT/cT: (1, B, H)."""
    x = x.astype(jnp.float32)
    B, T, F = x.shape
    H = w_hh.shape[1]

    # Time-major and flattened to (T*B, F) so the kernel's input projection is a
    # single 2-D MXU matmul with no in-kernel reshape.
    x_flat = jnp.transpose(x, (1, 0, 2)).reshape(T * B, F)
    h0_bh = h0.reshape(B, H).astype(jnp.float32)
    c0_bh = c0.reshape(B, H).astype(jnp.float32)

    wih_t = jnp.transpose(w_ih).astype(jnp.float32)           # (F, 4H)
    whh_t = jnp.transpose(w_hh).astype(jnp.float32)           # (H, 4H)
    bias = (b_ih + b_hh).reshape(1, 4 * H).astype(jnp.float32)

    def vmem():
        return pl.BlockSpec(memory_space=pltpu.MemorySpace.VMEM)

    # Everything (inputs, weights, states, scratch) is a few tens of KB, so a
    # single invocation with whole-array VMEM blocks is the right structure.
    # TODO(synk): for long sequences, tile the time axis with a grid and a
    # (TILE_T*B, F) BlockSpec on x instead of loading all timesteps at once.
    h_all, hT, cT = pl.pallas_call(
        _lstm_kernel,
        out_shape=(
            jax.ShapeDtypeStruct((T * B, H), jnp.float32),    # all hidden states
            jax.ShapeDtypeStruct((B, H), jnp.float32),        # h_T
            jax.ShapeDtypeStruct((B, H), jnp.float32),        # c_T
        ),
        in_specs=[vmem() for _ in range(6)],
        out_specs=(vmem(), vmem(), vmem()),
        scratch_shapes=[pltpu.VMEM((T * B, 4 * H), jnp.float32)],
    )(x_flat, h0_bh, c0_bh, wih_t, whh_t, bias)

    # Linear head applied once over every timestep (one batched matmul in XLA);
    # keeps the kernel's per-step stores lane-dense instead of T width-1 stores.
    y = (h_all.reshape(T, B, H).transpose(1, 0, 2)
         @ jnp.transpose(w_out).astype(jnp.float32)
         + b_out.astype(jnp.float32))                          # (B, T, 1)
    return y, (hT.reshape(1, B, H), cT.reshape(1, B, H))


def lstm_reference(x, h0, c0, w_ih, w_hh, b_ih, b_hh, w_out, b_out):
    """Pure-JAX reference (lax.scan) with identical semantics."""
    B, T, F = x.shape
    H = w_hh.shape[1]
    h = h0.reshape(B, H)
    c = c0.reshape(B, H)
    bias = b_ih + b_hh

    def step(carry, x_t):
        h, c = carry
        gates = x_t @ w_ih.T + h @ w_hh.T + bias
        i, f, g, o = jnp.split(gates, 4, axis=-1)
        i, f, o = jax.nn.sigmoid(i), jax.nn.sigmoid(f), jax.nn.sigmoid(o)
        g = jnp.tanh(g)
        c = f * c + i * g
        h = o * jnp.tanh(c)
        y = h @ w_out.T + b_out
        return (h, c), y

    (hT, cT), ys = jax.lax.scan(step, (h, c), jnp.transpose(x, (1, 0, 2)))
    return jnp.transpose(ys, (1, 0, 2)), (hT.reshape(1, B, H), cT.reshape(1, B, H))


def _xavier_normal(key, shape):
    # matches torch.nn.init.xavier_normal_ for a (1, B, H) tensor:
    # fan_in = B (dim -2), fan_out = H (dim -1) -- leading dims ignored.
    fan_in, fan_out = shape[-2], shape[-1]
    std = (2.0 / (fan_in + fan_out)) ** 0.5
    return std * jax.random.normal(key, shape, dtype=jnp.float32)


if __name__ == "__main__":
    # Small, module-consistent shapes.
    B, T, F, H = 8, 8, 16, 32

    key = jax.random.PRNGKey(0)
    kx, kh, kc, k1, k2, k3, k4, k5, k6 = jax.random.split(key, 9)

    x = jax.random.normal(kx, (B, T, F), dtype=jnp.float32)

    # self.hidden = init_hidden(): xavier_normal_ on (1, B, H) tensors.
    h0 = _xavier_normal(kh, (1, B, H))
    c0 = _xavier_normal(kc, (1, B, H))

    # Deterministic LSTM / Linear parameters (uniform like PyTorch's default range).
    bound = 1.0 / (H ** 0.5)
    w_ih = jax.random.uniform(k1, (4 * H, F), jnp.float32, -bound, bound)
    w_hh = jax.random.uniform(k2, (4 * H, H), jnp.float32, -bound, bound)
    b_ih = jax.random.uniform(k3, (4 * H,), jnp.float32, -bound, bound)
    b_hh = jax.random.uniform(k4, (4 * H,), jnp.float32, -bound, bound)
    w_out = jax.random.uniform(k5, (1, H), jnp.float32, -bound, bound)
    b_out = jax.random.uniform(k6, (1,), jnp.float32, -bound, bound)

    y, (hT, cT) = jax.jit(lstm_forward)(x, h0, c0, w_ih, w_hh, b_ih, b_hh, w_out, b_out)
    jax.block_until_ready((y, hT, cT))

    y_ref, (hT_ref, cT_ref) = lstm_reference(x, h0, c0, w_ih, w_hh, b_ih, b_hh, w_out, b_out)

    assert y.shape == (B, T, 1) and hT.shape == (1, B, H) and cT.shape == (1, B, H)
    assert jnp.allclose(y, y_ref, atol=2e-3, rtol=2e-3)
    assert jnp.allclose(hT, hT_ref, atol=2e-3, rtol=2e-3)
    assert jnp.allclose(cT, cT_ref, atol=2e-3, rtol=2e-3)

    print("KERNEL_OK")
</pallas_src>

<mosaic_0001>
module attributes {stable_mosaic.version = 11 : i64} {
  func.func @_lstm_kernel(%arg0: memref<64x16xf32, #tpu.memory_space<vmem>>, %arg1: memref<8x32xf32, #tpu.memory_space<vmem>>, %arg2: memref<8x32xf32, #tpu.memory_space<vmem>>, %arg3: memref<16x128xf32, #tpu.memory_space<vmem>>, %arg4: memref<32x128xf32, #tpu.memory_space<vmem>>, %arg5: memref<1x128xf32, #tpu.memory_space<vmem>>, %arg6: memref<64x32xf32, #tpu.memory_space<vmem>>, %arg7: memref<8x32xf32, #tpu.memory_space<vmem>>, %arg8: memref<8x32xf32, #tpu.memory_space<vmem>>, %arg9: memref<64x128xf32, #tpu.memory_space<vmem>>) attributes {dimension_semantics = [], scalar_prefetch = 0 : i64, scratch_operands = 1 : i64, tpu.core_type = #tpu.core_type<tc>} {
    %c0 = arith.constant 0 : index
    %c0_0 = arith.constant 0 : index
    %0 = vector.load %arg0[%c0, %c0_0] : memref<64x16xf32, #tpu.memory_space<vmem>>, vector<64x16xf32>
    %c0_1 = arith.constant 0 : index
    %c0_2 = arith.constant 0 : index
    %1 = vector.load %arg3[%c0_1, %c0_2] : memref<16x128xf32, #tpu.memory_space<vmem>>, vector<16x128xf32>
    %cst = arith.constant dense<0.000000e+00> : vector<64x128xf32>
    %2 = tpu.matmul %0, %1, %cst {dimension_numbers = #tpu.dot_dimension_numbers<[1], [0], [0], [1], [0, 0, 1, 1], [], []>} : vector<64x16xf32>, vector<16x128xf32>, vector<64x128xf32> -> vector<64x128xf32>
    %c0_3 = arith.constant 0 : index
    %c0_4 = arith.constant 0 : index
    %3 = vector.load %arg5[%c0_3, %c0_4] : memref<1x128xf32, #tpu.memory_space<vmem>>, vector<1x128xf32>
    %4 = vector.broadcast %3 : vector<1x128xf32> to vector<64x128xf32>
    %5 = arith.addf %2, %4 : vector<64x128xf32>
    %c0_5 = arith.constant 0 : index
    %c0_6 = arith.constant 0 : index
    %6 = vector.load %arg9[%c0_5, %c0_6] : memref<64x128xf32, #tpu.memory_space<vmem>>, vector<64x128xf32>
    tpu.vector_store %arg9[%c0_5, %c0_6], %5 {strides = array<i32>} : memref<64x128xf32, #tpu.memory_space<vmem>>, vector<64x128xf32>,
    %c0_7 = arith.constant 0 : index
    %c0_8 = arith.constant 0 : index
    %7 = vector.load %arg4[%c0_7, %c0_8] : memref<32x128xf32, #tpu.memory_space<vmem>>, vector<32x128xf32>
    %c0_9 = arith.constant 0 : index
    %c0_10 = arith.constant 0 : index
    %8 = vector.load %arg1[%c0_9, %c0_10] : memref<8x32xf32, #tpu.memory_space<vmem>>, vector<8x32xf32>
    %c0_11 = arith.constant 0 : index
    %c0_12 = arith.constant 0 : index
    %9 = vector.load %arg2[%c0_11, %c0_12] : memref<8x32xf32, #tpu.memory_space<vmem>>, vector<8x32xf32>
    %c0_i32 = arith.constant 0 : i32
    %c8_i32 = arith.constant 8 : i32
    %10 = arith.muli %c0_i32, %c8_i32 : i32
    %11 = tpu.assume_multiple %10, 8 : i32
    %12 = arith.index_cast %11 : i32 to index
    %c0_13 = arith.constant 0 : index
    %13 = vector.load %arg9[%12, %c0_13] : memref<64x128xf32, #tpu.memory_space<vmem>>, vector<8x128xf32>
    %cst_14 = arith.constant dense<0.000000e+00> : vector<8x128xf32>
    %14 = tpu.matmul %8, %7, %cst_14 {dimension_numbers = #tpu.dot_dimension_numbers<[1], [0], [0], [1], [0, 0, 1, 1], [], []>} : vector<8x32xf32>, vector<32x128xf32>, vector<8x128xf32> -> vector<8x128xf32>
    %15 = arith.addf %13, %14 : vector<8x128xf32>
    %16 = arith.negf %15 : vector<8x128xf32>
    %17 = math.exp %16 : vector<8x128xf32>
    %cst_15 = arith.constant 1.000000e+00 : f32
    %18 = vector.broadcast %cst_15 : f32 to vector<8x128xf32>
    %19 = arith.addf %18, %17 : vector<8x128xf32>
    %20 = arith.divf %18, %19 : vector<8x128xf32>
    %21 = math.tanh %15 : vector<8x128xf32>
    %22 = vector.extract_strided_slice %20 {offsets = [0, 0], sizes = [8, 32], strides = [1, 1]} : vector<8x128xf32> to vector<8x32xf32>
    %23 = vector.extract_strided_slice %20 {offsets = [0, 32], sizes = [8, 32], strides = [1, 1]} : vector<8x128xf32> to vector<8x32xf32>
    %24 = vector.extract_strided_slice %21 {offsets = [0, 64], sizes = [8, 32], strides = [1, 1]} : vector<8x128xf32> to vector<8x32xf32>
    %25 = vector.extract_strided_slice %20 {offsets = [0, 96], sizes = [8, 32], strides = [1, 1]} : vector<8x128xf32> to vector<8x32xf32>
    %26 = arith.mulf %23, %9 : vector<8x32xf32>
    %27 = arith.mulf %22, %24 : vector<8x32xf32>
    %28 = arith.addf %26, %27 : vector<8x32xf32>
    %29 = math.tanh %28 : vector<8x32xf32>
    %30 = arith.mulf %25, %29 : vector<8x32xf32>
    %31 = arith.index_cast %11 : i32 to index
    %c0_16 = arith.constant 0 : index
    %32 = vector.load %arg6[%31, %c0_16] : memref<64x32xf32, #tpu.memory_space<vmem>>, vector<8x32xf32>
    tpu.vector_store %arg6[%31, %c0_16], %30 {strides = array<i32>} : memref<64x32xf32, #tpu.memory_space<vmem>>, vector<8x32xf32>,
    %c1_i32 = arith.constant 1 : i32
    %c8_i32_17 = arith.constant 8 : i32
    %33 = arith.muli %c1_i32, %c8_i32_17 : i32
    %34 = tpu.assume_multiple %33, 8 : i32
    %35 = arith.index_cast %34 : i32 to index
    %c0_18 = arith.constant 0 : index
    %36 = vector.load %arg9[%35, %c0_18] : memref<64x128xf32, #tpu.memory_space<vmem>>, vector<8x128xf32>
    %cst_19 = arith.constant dense<0.000000e+00> : vector<8x128xf32>
    %37 = tpu.matmul %30, %7, %cst_19 {dimension_numbers = #tpu.dot_dimension_numbers<[1], [0], [0], [1], [0, 0, 1, 1], [], []>} : vector<8x32xf32>, vector<32x128xf32>, vector<8x128xf32> -> vector<8x128xf32>
    %38 = arith.addf %36, %37 : vector<8x128xf32>
    %39 = arith.negf %38 : vector<8x128xf32>
    %40 = math.exp %39 : vector<8x128xf32>
    %cst_20 = arith.constant 1.000000e+00 : f32
    %41 = vector.broadcast %cst_20 : f32 to vector<8x128xf32>
    %42 = arith.addf %41, %40 : vector<8x128xf32>
    %43 = arith.divf %41, %42 : vector<8x128xf32>
    %44 = math.tanh %38 : vector<8x128xf32>
    %45 = vector.extract_strided_slice %43 {offsets = [0, 0], sizes = [8, 32], strides = [1, 1]} : vector<8x128xf32> to vector<8x32xf32>
    %46 = vector.extract_strided_slice %43 {offsets = [0, 32], sizes = [8, 32], strides = [1, 1]} : vector<8x128xf32> to vector<8x32xf32>
    %47 = vector.extract_strided_slice %44 {offsets = [0, 64], sizes = [8, 32], strides = [1, 1]} : vector<8x128xf32> to vector<8x32xf32>
    %48 = vector.extract_strided_slice %43 {offsets = [0, 96], sizes = [8, 32], strides = [1, 1]} : vector<8x128xf32> to vector<8x32xf32>
    %49 = arith.mulf %46, %28 : vector<8x32xf32>
    %50 = arith.mulf %45, %47 : vector<8x32xf32>
    %51 = arith.addf %49, %50 : vector<8x32xf32>
    %52 = math.tanh %51 : vector<8x32xf32>
    %53 = arith.mulf %48, %52 : vector<8x32xf32>
    %54 = arith.index_cast %34 : i32 to index
    %c0_21 = arith.constant 0 : index
    %55 = vector.load %arg6[%54, %c0_21] : memref<64x32xf32, #tpu.memory_space<vmem>>, vector<8x32xf32>
    tpu.vector_store %arg6[%54, %c0_21], %53 {strides = array<i32>} : memref<64x32xf32, #tpu.memory_space<vmem>>, vector<8x32xf32>,
    %c2_i32 = arith.constant 2 : i32
    %c8_i32_22 = arith.constant 8 : i32
    %56 = arith.muli %c2_i32, %c8_i32_22 : i32
    %57 = tpu.assume_multiple %56, 8 : i32
    %58 = arith.index_cast %57 : i32 to index
    %c0_23 = arith.constant 0 : index
    %59 = vector.load %arg9[%58, %c0_23] : memref<64x128xf32, #tpu.memory_space<vmem>>, vector<8x128xf32>
    %cst_24 = arith.constant dense<0.000000e+00> : vector<8x128xf32>
    %60 = tpu.matmul %53, %7, %cst_24 {dimension_numbers = #tpu.dot_dimension_numbers<[1], [0], [0], [1], [0, 0, 1, 1], [], []>} : vector<8x32xf32>, vector<32x128xf32>, vector<8x128xf32> -> vector<8x128xf32>
    %61 = arith.addf %59, %60 : vector<8x128xf32>
    %62 = arith.negf %61 : vector<8x128xf32>
    %63 = math.exp %62 : vector<8x128xf32>
    %cst_25 = arith.constant 1.000000e+00 : f32
    %64 = vector.broadcast %cst_25 : f32 to vector<8x128xf32>
    %65 = arith.addf %64, %63 : vector<8x128xf32>
    %66 = arith.divf %64, %65 : vector<8x128xf32>
    %67 = math.tanh %61 : vector<8x128xf32>
    %68 = vector.extract_strided_slice %66 {offsets = [0, 0], sizes = [8, 32], strides = [1, 1]} : vector<8x128xf32> to vector<8x32xf32>
    %69 = vector.extract_strided_slice %66 {offsets = [0, 32], sizes = [8, 32], strides = [1, 1]} : vector<8x128xf32> to vector<8x32xf32>
    %70 = vector.extract_strided_slice %67 {offsets = [0, 64], sizes = [8, 32], strides = [1, 1]} : vector<8x128xf32> to vector<8x32xf32>
    %71 = vector.extract_strided_slice %66 {offsets = [0, 96], sizes = [8, 32], strides = [1, 1]} : vector<8x128xf32> to vector<8x32xf32>
    %72 = arith.mulf %69, %51 : vector<8x32xf32>
    %73 = arith.mulf %68, %70 : vector<8x32xf32>
    %74 = arith.addf %72, %73 : vector<8x32xf32>
    %75 = math.tanh %74 : vector<8x32xf32>
    %76 = arith.mulf %71, %75 : vector<8x32xf32>
    %77 = arith.index_cast %57 : i32 to index
    %c0_26 = arith.constant 0 : index
    %78 = vector.load %arg6[%77, %c0_26] : memref<64x32xf32, #tpu.memory_space<vmem>>, vector<8x32xf32>
    tpu.vector_store %arg6[%77, %c0_26], %76 {strides = array<i32>} : memref<64x32xf32, #tpu.memory_space<vmem>>, vector<8x32xf32>,
    %c3_i32 = arith.constant 3 : i32
    %c8_i32_27 = arith.constant 8 : i32
    %79 = arith.muli %c3_i32, %c8_i32_27 : i32
    %80 = tpu.assume_multiple %79, 8 : i32
    %81 = arith.index_cast %80 : i32 to index
    %c0_28 = arith.constant 0 : index
    %82 = vector.load %arg9[%81, %c0_28] : memref<64x128xf32, #tpu.memory_space<vmem>>, vector<8x128xf32>
    %cst_29 = arith.constant dense<0.000000e+00> : vector<8x128xf32>
    %83 = tpu.matmul %76, %7, %cst_29 {dimension_numbers = #tpu.dot_dimension_numbers<[1], [0], [0], [1], [0, 0, 1, 1], [], []>} : vector<8x32xf32>, vector<32x128xf32>, vector<8x128xf32> -> vector<8x128xf32>
    %84 = arith.addf %82, %83 : vector<8x128xf32>
    %85 = arith.negf %84 : vector<8x128xf32>
    %86 = math.exp %85 : vector<8x128xf32>
    %cst_30 = arith.constant 1.000000e+00 : f32
    %87 = vector.broadcast %cst_30 : f32 to vector<8x128xf32>
    %88 = arith.addf %87, %86 : vector<8x128xf32>
    %89 = arith.divf %87, %88 : vector<8x128xf32>
    %90 = math.tanh %84 : vector<8x128xf32>
    %91 = vector.extract_strided_slice %89 {offsets = [0, 0], sizes = [8, 32], strides = [1, 1]} : vector<8x128xf32> to vector<8x32xf32>
    %92 = vector.extract_strided_slice %89 {offsets = [0, 32], sizes = [8, 32], strides = [1, 1]} : vector<8x128xf32> to vector<8x32xf32>
    %93 = vector.extract_strided_slice %90 {offsets = [0, 64], sizes = [8, 32], strides = [1, 1]} : vector<8x128xf32> to vector<8x32xf32>
    %94 = vector.extract_strided_slice %89 {offsets = [0, 96], sizes = [8, 32], strides = [1, 1]} : vector<8x128xf32> to vector<8x32xf32>
    %95 = arith.mulf %92, %74 : vector<8x32xf32>
    %96 = arith.mulf %91, %93 : vector<8x32xf32>
    %97 = arith.addf %95, %96 : vector<8x32xf32>
    %98 = math.tanh %97 : vector<8x32xf32>
    %99 = arith.mulf %94, %98 : vector<8x32xf32>
    %100 = arith.index_cast %80 : i32 to index
    %c0_31 = arith.constant 0 : index
    %101 = vector.load %arg6[%100, %c0_31] : memref<64x32xf32, #tpu.memory_space<vmem>>, vector<8x32xf32>
    tpu.vector_store %arg6[%100, %c0_31], %99 {strides = array<i32>} : memref<64x32xf32, #tpu.memory_space<vmem>>, vector<8x32xf32>,
    %c4_i32 = arith.constant 4 : i32
    %c8_i32_32 = arith.constant 8 : i32
    %102 = arith.muli %c4_i32, %c8_i32_32 : i32
    %103 = tpu.assume_multiple %102, 8 : i32
    %104 = arith.index_cast %103 : i32 to index
    %c0_33 = arith.constant 0 : index
    %105 = vector.load %arg9[%104, %c0_33] : memref<64x128xf32, #tpu.memory_space<vmem>>, vector<8x128xf32>
    %cst_34 = arith.constant dense<0.000000e+00> : vector<8x128xf32>
    %106 = tpu.matmul %99, %7, %cst_34 {dimension_numbers = #tpu.dot_dimension_numbers<[1], [0], [0], [1], [0, 0, 1, 1], [], []>} : vector<8x32xf32>, vector<32x128xf32>, vector<8x128xf32> -> vector<8x128xf32>
    %107 = arith.addf %105, %106 : vector<8x128xf32>
    %108 = arith.negf %107 : vector<8x128xf32>
    %109 = math.exp %108 : vector<8x128xf32>
    %cst_35 = arith.constant 1.000000e+00 : f32
    %110 = vector.broadcast %cst_35 : f32 to vector<8x128xf32>
    %111 = arith.addf %110, %109 : vector<8x128xf32>
    %112 = arith.divf %110, %111 : vector<8x128xf32>
    %113 = math.tanh %107 : vector<8x128xf32>
    %114 = vector.extract_strided_slice %112 {offsets = [0, 0], sizes = [8, 32], strides = [1, 1]} : vector<8x128xf32> to vector<8x32xf32>
    %115 = vector.extract_strided_slice %112 {offsets = [0, 32], sizes = [8, 32], strides = [1, 1]} : vector<8x128xf32> to vector<8x32xf32>
    %116 = vector.extract_strided_slice %113 {offsets = [0, 64], sizes = [8, 32], strides = [1, 1]} : vector<8x128xf32> to vector<8x32xf32>
    %117 = vector.extract_strided_slice %112 {offsets = [0, 96], sizes = [8, 32], strides = [1, 1]} : vector<8x128xf32> to vector<8x32xf32>
    %118 = arith.mulf %115, %97 : vector<8x32xf32>
    %119 = arith.mulf %114, %116 : vector<8x32xf32>
    %120 = arith.addf %118, %119 : vector<8x32xf32>
    %121 = math.tanh %120 : vector<8x32xf32>
    %122 = arith.mulf %117, %121 : vector<8x32xf32>
    %123 = arith.index_cast %103 : i32 to index
    %c0_36 = arith.constant 0 : index
    %124 = vector.load %arg6[%123, %c0_36] : memref<64x32xf32, #tpu.memory_space<vmem>>, vector<8x32xf32>
    tpu.vector_store %arg6[%123, %c0_36], %122 {strides = array<i32>} : memref<64x32xf32, #tpu.memory_space<vmem>>, vector<8x32xf32>,
    %c5_i32 = arith.constant 5 : i32
    %c8_i32_37 = arith.constant 8 : i32
    %125 = arith.muli %c5_i32, %c8_i32_37 : i32
    %126 = tpu.assume_multiple %125, 8 : i32
    %127 = arith.index_cast %126 : i32 to index
    %c0_38 = arith.constant 0 : index
    %128 = vector.load %arg9[%127, %c0_38] : memref<64x128xf32, #tpu.memory_space<vmem>>, vector<8x128xf32>
    %cst_39 = arith.constant dense<0.000000e+00> : vector<8x128xf32>
    %129 = tpu.matmul %122, %7, %cst_39 {dimension_numbers = #tpu.dot_dimension_numbers<[1], [0], [0], [1], [0, 0, 1, 1], [], []>} : vector<8x32xf32>, vector<32x128xf32>, vector<8x128xf32> -> vector<8x128xf32>
    %130 = arith.addf %128, %129 : vector<8x128xf32>
    %131 = arith.negf %130 : vector<8x128xf32>
    %132 = math.exp %131 : vector<8x128xf32>
    %cst_40 = arith.constant 1.000000e+00 : f32
    %133 = vector.broadcast %cst_40 : f32 to vector<8x128xf32>
    %134 = arith.addf %133, %132 : vector<8x128xf32>
    %135 = arith.divf %133, %134 : vector<8x128xf32>
    %136 = math.tanh %130 : vector<8x128xf32>
    %137 = vector.extract_strided_slice %135 {offsets = [0, 0], sizes = [8, 32], strides = [1, 1]} : vector<8x128xf32> to vector<8x32xf32>
    %138 = vector.extract_strided_slice %135 {offsets = [0, 32], sizes = [8, 32], strides = [1, 1]} : vector<8x128xf32> to vector<8x32xf32>
    %139 = vector.extract_strided_slice %136 {offsets = [0, 64], sizes = [8, 32], strides = [1, 1]} : vector<8x128xf32> to vector<8x32xf32>
    %140 = vector.extract_strided_slice %135 {offsets = [0, 96], sizes = [8, 32], strides = [1, 1]} : vector<8x128xf32> to vector<8x32xf32>
    %141 = arith.mulf %138, %120 : vector<8x32xf32>
    %142 = arith.mulf %137, %139 : vector<8x32xf32>
    %143 = arith.addf %141, %142 : vector<8x32xf32>
    %144 = math.tanh %143 : vector<8x32xf32>
    %145 = arith.mulf %140, %144 : vector<8x32xf32>
    %146 = arith.index_cast %126 : i32 to index
    %c0_41 = arith.constant 0 : index
    %147 = vector.load %arg6[%146, %c0_41] : memref<64x32xf32, #tpu.memory_space<vmem>>, vector<8x32xf32>
    tpu.vector_store %arg6[%146, %c0_41], %145 {strides = array<i32>} : memref<64x32xf32, #tpu.memory_space<vmem>>, vector<8x32xf32>,
    %c6_i32 = arith.constant 6 : i32
    %c8_i32_42 = arith.constant 8 : i32
    %148 = arith.muli %c6_i32, %c8_i32_42 : i32
    %149 = tpu.assume_multiple %148, 8 : i32
    %150 = arith.index_cast %149 : i32 to index
    %c0_43 = arith.constant 0 : index
    %151 = vector.load %arg9[%150, %c0_43] : memref<64x128xf32, #tpu.memory_space<vmem>>, vector<8x128xf32>
    %cst_44 = arith.constant dense<0.000000e+00> : vector<8x128xf32>
    %152 = tpu.matmul %145, %7, %cst_44 {dimension_numbers = #tpu.dot_dimension_numbers<[1], [0], [0], [1], [0, 0, 1, 1], [], []>} : vector<8x32xf32>, vector<32x128xf32>, vector<8x128xf32> -> vector<8x128xf32>
    %153 = arith.addf %151, %152 : vector<8x128xf32>
    %154 = arith.negf %153 : vector<8x128xf32>
    %155 = math.exp %154 : vector<8x128xf32>
    %cst_45 = arith.constant 1.000000e+00 : f32
    %156 = vector.broadcast %cst_45 : f32 to vector<8x128xf32>
    %157 = arith.addf %156, %155 : vector<8x128xf32>
    %158 = arith.divf %156, %157 : vector<8x128xf32>
    %159 = math.tanh %153 : vector<8x128xf32>
    %160 = vector.extract_strided_slice %158 {offsets = [0, 0], sizes = [8, 32], strides = [1, 1]} : vector<8x128xf32> to vector<8x32xf32>
    %161 = vector.extract_strided_slice %158 {offsets = [0, 32], sizes = [8, 32], strides = [1, 1]} : vector<8x128xf32> to vector<8x32xf32>
    %162 = vector.extract_strided_slice %159 {offsets = [0, 64], sizes = [8, 32], strides = [1, 1]} : vector<8x128xf32> to vector<8x32xf32>
    %163 = vector.extract_strided_slice %158 {offsets = [0, 96], sizes = [8, 32], strides = [1, 1]} : vector<8x128xf32> to vector<8x32xf32>
    %164 = arith.mulf %161, %143 : vector<8x32xf32>
    %165 = arith.mulf %160, %162 : vector<8x32xf32>
    %166 = arith.addf %164, %165 : vector<8x32xf32>
    %167 = math.tanh %166 : vector<8x32xf32>
    %168 = arith.mulf %163, %167 : vector<8x32xf32>
    %169 = arith.index_cast %149 : i32 to index
    %c0_46 = arith.constant 0 : index
    %170 = vector.load %arg6[%169, %c0_46] : memref<64x32xf32, #tpu.memory_space<vmem>>, vector<8x32xf32>
    tpu.vector_store %arg6[%169, %c0_46], %168 {strides = array<i32>} : memref<64x32xf32, #tpu.memory_space<vmem>>, vector<8x32xf32>,
    %c7_i32 = arith.constant 7 : i32
    %c8_i32_47 = arith.constant 8 : i32
    %171 = arith.muli %c7_i32, %c8_i32_47 : i32
    %172 = tpu.assume_multiple %171, 8 : i32
    %173 = arith.index_cast %172 : i32 to index
    %c0_48 = arith.constant 0 : index
    %174 = vector.load %arg9[%173, %c0_48] : memref<64x128xf32, #tpu.memory_space<vmem>>, vector<8x128xf32>
    %cst_49 = arith.constant dense<0.000000e+00> : vector<8x128xf32>
    %175 = tpu.matmul %168, %7, %cst_49 {dimension_numbers = #tpu.dot_dimension_numbers<[1], [0], [0], [1], [0, 0, 1, 1], [], []>} : vector<8x32xf32>, vector<32x128xf32>, vector<8x128xf32> -> vector<8x128xf32>
    %176 = arith.addf %174, %175 : vector<8x128xf32>
    %177 = arith.negf %176 : vector<8x128xf32>
    %178 = math.exp %177 : vector<8x128xf32>
    %cst_50 = arith.constant 1.000000e+00 : f32
    %179 = vector.broadcast %cst_50 : f32 to vector<8x128xf32>
    %180 = arith.addf %179, %178 : vector<8x128xf32>
    %181 = arith.divf %179, %180 : vector<8x128xf32>
    %182 = math.tanh %176 : vector<8x128xf32>
    %183 = vector.extract_strided_slice %181 {offsets = [0, 0], sizes = [8, 32], strides = [1, 1]} : vector<8x128xf32> to vector<8x32xf32>
    %184 = vector.extract_strided_slice %181 {offsets = [0, 32], sizes = [8, 32], strides = [1, 1]} : vector<8x128xf32> to vector<8x32xf32>
    %185 = vector.extract_strided_slice %182 {offsets = [0, 64], sizes = [8, 32], strides = [1, 1]} : vector<8x128xf32> to vector<8x32xf32>
    %186 = vector.extract_strided_slice %181 {offsets = [0, 96], sizes = [8, 32], strides = [1, 1]} : vector<8x128xf32> to vector<8x32xf32>
    %187 = arith.mulf %184, %166 : vector<8x32xf32>
    %188 = arith.mulf %183, %185 : vector<8x32xf32>
    %189 = arith.addf %187, %188 : vector<8x32xf32>
    %190 = math.tanh %189 : vector<8x32xf32>
    %191 = arith.mulf %186, %190 : vector<8x32xf32>
    %192 = arith.index_cast %172 : i32 to index
    %c0_51 = arith.constant 0 : index
    %193 = vector.load %arg6[%192, %c0_51] : memref<64x32xf32, #tpu.memory_space<vmem>>, vector<8x32xf32>
    tpu.vector_store %arg6[%192, %c0_51], %191 {strides = array<i32>} : memref<64x32xf32, #tpu.memory_space<vmem>>, vector<8x32xf32>,
    %c8_i32_52 = arith.constant 8 : i32
    %c0_53 = arith.constant 0 : index
    %c0_54 = arith.constant 0 : index
    %194 = vector.load %arg7[%c0_53, %c0_54] : memref<8x32xf32, #tpu.memory_space<vmem>>, vector<8x32xf32>
    tpu.vector_store %arg7[%c0_53, %c0_54], %191 {strides = array<i32>} : memref<8x32xf32, #tpu.memory_space<vmem>>, vector<8x32xf32>,
    %c0_55 = arith.constant 0 : index
    %c0_56 = arith.constant 0 : index
    %195 = vector.load %arg8[%c0_55, %c0_56] : memref<8x32xf32, #tpu.memory_space<vmem>>, vector<8x32xf32>
    tpu.vector_store %arg8[%c0_55, %c0_56], %189 {strides = array<i32>} : memref<8x32xf32, #tpu.memory_space<vmem>>, vector<8x32xf32>,
    return
  }
}

</mosaic_0001>

<bundles_post_ra>
// kernel: lstm_forward.1
= control target key start
LH: loop header
LB: loop body
LE: loop exit
PB: predicated region body
PF: predicated region fallthrough
CT: control target
= control target key end

     0   :  { %14 = vsyncpa [#allocation4], 0  ;;  %vm45_vm0 = vcmask 130048   ;;  %v1429_v3 = vmov 0.0|0.0   ;;  %vm1430_vm1 = vmmov 0   ;;  %v1431_v10 = vmov 0.0   ;;  %s1714_s0 = inlined_call_operand.vmem [shape: f32[64,16], index: 0, kind: input, shape index: {}]   ;;  %s1715_s1 = inlined_call_operand.vmem [shape: f32[8,32], index: 1, kind: input, shape index: {}]   ;;  %s1716_s2 = inlined_call_operand.vmem [shape: f32[8,32], index: 2, kind: input, shape index: {}]   ;;  %s1717_s3 = inlined_call_operand.vmem [shape: f32[16,128], index: 3, kind: input, shape index: {}]   ;;  %s1718_s4 = inlined_call_operand.vmem [shape: f32[32,128], index: 4, kind: input, shape index: {}]   ;;  %s1719_s5 = inlined_call_operand.vmem [shape: f32[1,128], index: 5, kind: input, shape index: {}]   ;;  %s1720_s6 = inlined_call_operand.vmem [shape: f32[64,32], index: 6, kind: output, shape index: {0}]   ;;  %s1721_s7 = inlined_call_operand.hbm [shape: f32[8,32], index: 7, kind: output, shape index: {1}]   ;;  %s1722_s8 = inlined_call_operand.hbm [shape: f32[8,32], index: 8, kind: output, shape index: {2}]  }
   0x1   :  { %v36_v0 = vld [vmem:[%s1717_s3] sm:$0xff]  ;;  %v37_v1 = vld [vmem:[%s1717_s3 + $0x8] sm:$0xff]  ;;  %1261 = vmatprep.subr.bf16.mxu1 %v1429_v3  ;;  %v185_v8 = vld [vmem:[%s1718_s4 + $0x10] sm:$0xff]  ;;  %1177 = vmatprep.mubr.msk.f32.mxu1 %vm1430_vm1, %v1431_v10 }
   0x2   :  { %v183_v2 = vld [vmem:[%s1718_s4] sm:$0xff]  ;;  %v1257_v4 = vpack.c.bf16 %v37_v1, %v36_v0  ;;  %v184_v5 = vld [vmem:[%s1718_s4 + $0x8] sm:$0xff]  ;;  %v186_v9 = vld [vmem:[%s1718_s4 + $0x18] sm:$0xff] }
   0x3   :  { %v28_v6 = vld [vmem:[%s1714_s0] sm:$0xff]  ;;  %v1498_v7 = vpack.c.bf16 %v184_v5, %v183_v2 }
   0x4   :  { %1157 = vmatprep.mubr.msk.f32.mxu0 %vm45_vm0, %v28_v6  ;;  %1258 = vmatprep.subr.bf16.mxu0 %v1257_v4 }
   0x5   :  { %15 = vsyncpa [#allocation6], 0  ;;  %1263 = vmatpush3.bf16.msra.mxu1 %v1498_v7  ;;  %1260 = vmatpush3.bf16.msra.mxu0 %v1257_v4  ;;  %v29_v11 = vld [vmem:[%s1714_s0 + $0x8] sm:$0xff]  ;;  %v1513_v12 = vpack.c.bf16 %v186_v9, %v185_v8  ;;  %v187_v13 = vld [vmem:[%s1715_s1] sm:$0xff]  ;;  %vm190_vm2 = vcmask 261120   ;;  %s1432_s22 = smov 64  }
   0x6   :  { %1264 = vmatprep.subr.bf16.mxu1 %v1429_v3  ;;  %1273 = vmatprep.subr.bf16.mxu0 %v1429_v3  ;;  %v1537_v14 = vld [vmem:[%s1719_s5] ss:$0 sm:$0xff]  ;;  %s1433_s25 = smov 32   ;;  %v30_v51 = vld [vmem:[%s1714_s0 + $0x10] sm:$0xff]  ;;  %v31_v52 = vld [vmem:[%s1714_s0 + $0x18] sm:$0xff]  ;;  %s1435_s5 = smov [#allocation5]  }
   0x7   :  { %v188_v22 = vld [vmem:[%s1716_s2] sm:$0xff]  ;;  %v33_v54 = vld [vmem:[%s1714_s0 + $0x28] sm:$0xff]  ;;  %v34_v55 = vld [vmem:[%s1714_s0 + $0x30] sm:$0xff]  ;;  %s1434_s2 = smov 96   ;;  %s1057_s26 = sshll.u32 %s1435_s5, 4  ;;  %s1058_s26 = int_to_ptr.vmem [resolvable:$true] %s1057_s26 }
   0x8   :  { %1158 = vmatmul.mubr.msk.f32.vlgmr.msra.gmra.mrb[0].mxu0 %vm45_vm0, %v29_v11  ;;  %v32_v53 = vld [vmem:[%s1714_s0 + $0x20] sm:$0xff]  ;;  %v35_v56 = vld [vmem:[%s1714_s0 + $0x38] sm:$0xff]  ;;  %s1381_s27 = scalar_lea.vmem %s1058_s26, 128  ;;  %p1386_p1 = scmp.lt.s32.totalorder %s1058_s26, %s1058_s26 }
   0x9   :  { %1266 = vmatpush3.bf16.msra.mxu1 %v1513_v12  ;;  %1275 = vmatpush3.bf16.msra.mxu0 %v1498_v7  ;;  %p1382_p0 = scmp.ne.s32.totalorder %s1058_s26, %s1381_s27  ;;  %p1387_p2 = scmp.lt.s32.totalorder %s1381_s27, %s1381_s27 }
   0xa   :  { %1267 = vmatprep.subr.bf16.mxu1 %v1429_v3  ;;  %1276 = vmatprep.subr.bf16.mxu0 %v1429_v3 }
   0xb   :  { %1160 = vmatprep.mubr.msk.f32.mxu0 %vm45_vm0, %v30_v51  ;;  %p1388_p3 = por %p1387_p2, %p1386_p1 }
   0xc   :  { %1178 = vmatmul.mubr.msk.f32.vlgmr.msra.gmra.mrb[0].mxu1 %vm190_vm2, %v187_v13  ;;  %1161 = vmatmul.mubr.msk.f32.gmra.mrb[2].mxu0 %vm45_vm0, %v31_v52 }
   0xd   :  { %1269 = vmatpush3.bf16.msra.mxu1 %v1498_v7  ;;  %1188 = vmatprep.mubr.msk.f32.mxu1 %vm1430_vm1, %v1431_v10  ;;  %p1389_p4 = pnand %p1388_p3, %p1382_p0 }
   0xe   :  { %1270 = vmatprep.subr.bf16.mxu1 %v1429_v3  ;;  %1278 = vmatpush3.bf16.msra.mxu0 %v1513_v12 }
   0xf   :  { %1285 = vmatprep.subr.bf16.mxu0 %v1429_v3  ;;  %1163 = vmatprep.mubr.msk.f32.mxu0 %vm45_vm0, %v32_v53 }
  0x10   :  { %1164 = vmatmul.mubr.msk.f32.gmra.mrb[4].mxu0 %vm45_vm0, %v33_v54 }
  0x11   :  { %1272 = vmatpush3.bf16.msra.mxu1 %v1513_v12  ;;  %1166 = vmatprep.mubr.msk.f32.mxu0 %vm45_vm0, %v34_v55 }
  0x12   :  { %1279 = vmatprep.subr.bf16.mxu1 %v1429_v3 }
  0x14   :  { %1167 = vmatmul.mubr.msk.f32.gmra.mrb[6].mxu0 %vm45_vm0, %v35_v56 }
  0x15   :  { %1199 = vmatprep.mubr.msk.f32.mxu0 %vm1430_vm1, %v1431_v10 }
  0xdb   :  { %v1159_v15 = vpop.f32.mrb[0].mxu0 }
  0xdc   :  { %v136_v16 = vpop.f32.mrb[1].mxu0  ;;  %v142_v37 = vadd.f32 %v1159_v15, %v1537_v14 }
  0xdd   :  { %v137_v17 = vadd.f32 %v1537_v14, %v136_v16 }
  0xdf   :  { %v260_v18 = vpop.f32.mrb[0].mxu1  ;;  %v1162_v60 = vpop.f32.mrb[2].mxu0 }
  0xe0   :  { %v264_v19 = vadd.f32 %v260_v18, %v137_v17  ;;  %v1179_v20 = vpop.f32.mrb[1].mxu1  ;;  %v146_v61 = vpop.f32.mrb[3].mxu0 }
  0xe1   :  { %v147_v4 = vadd.f32 %v1537_v14, %v146_v61 }
  0xe2   :  { %1317 = vtanh.f32 %v264_v19  ;;  %v1081_v23 = vmul.f32 -1.442695, %v264_v19 }
  0xe3   :  { %v1590_v62 = vpop.f32.mrb[4].mxu0 }
  0xe4   :  { %1319 = vpow2.f32 %v1081_v23  ;;  %v1592_v63 = vpop.f32.mrb[5].mxu0 }
  0xe7   :  { %v1594_v0 = vpop.f32.mrb[6].mxu0 }
  0xe8   :  { %v1596_v1 = vpop.f32.mrb[7].mxu0 }
  0xec   :  { %v1318_v21 = vpop.eup %1317 }
  0xed   :  { %278 = vrot.lane.b32.xlu0 %v1318_v21, %s1432_s22 }
  0xee   :  { %v1320_v24 = vpop.eup %1319 }
  0xef   :  { %v268_v25 = vadd.f32 1.0, %v1320_v24 }
  0xf1   :  { %273 = vrot.lane.b32.xlu0 %v188_v22, %s1433_s25  ;;  %1321 = vrcp.f32 %v268_v25 }
  0xfb   :  { %v1322_v26 = vpop.eup %1321 }
 0x15f   :  { %v279_v27 = vpop.permute.xlu0 %278 }
 0x160   :  { %v281_v28 = vmul.f32 %v1322_v26, %v279_v27 }
 0x162   :  { %283 = vrot.lane.b32.xlu1 %v281_v28, %s1433_s25 }
 0x163   :  { %v274_v29 = vpop.permute.xlu0 %273 }
 0x164   :  { %v276_v30 = vmul.f32 %v1322_v26, %v274_v29 }
 0x1d4   :  { %v284_v31 = vpop.permute.xlu1 %283 }
 0x1d5   :  { %v286_v32 = vadd.f32 %v284_v31, %v276_v30 }
 0x1d7   :  { %1323 = vtanh.f32 %v286_v32 }
 0x1e1   :  { %v1324_v33 = vpop.eup %1323 }
 0x1e2   :  { %289 = vrot.lane.b32.xlu1 %v1324_v33, %s1432_s22 }
 0x254   :  { %v290_v34 = vpop.permute.xlu1 %289 }
 0x255   :  { %v292_v35 = vmul.f32 %v1322_v26, %v290_v34  ;;  %v152_v26 = vadd.f32 %v1162_v60, %v1537_v14 }
 0x257   :  { %294 = vrot.lane.b32.xlu0 %v292_v35, %s1433_s25 }
 0x2c9   :  { %v295_v36 = vpop.permute.xlu0 %294 }
 0x2ca   :  { %297 = vst.msk [vmem:[%s1720_s6] sm:$0xff] %vm190_vm2, %v295_v36  ;;  %1189 = vmatmul.mubr.msk.f32.vlgmr.msra.gmra.mrb[2].mxu1 %vm190_vm2, %v295_v36 }
 0x2cb   :  { %1281 = vmatpush3.bf16.msra.mxu1 %v1498_v7  ;;  %1210 = vmatprep.mubr.msk.f32.mxu1 %vm1430_vm1, %v1431_v10 }
 0x2cc   :  { %1282 = vmatprep.subr.bf16.mxu1 %v1429_v3 }
 0x2cf   :  { %1284 = vmatpush3.bf16.msra.mxu1 %v1513_v12 }
 0x2d0   :  { %1291 = vmatprep.subr.bf16.mxu1 %v1429_v3 }
 0x39d   :  { %v368_v38 = vpop.f32.mrb[2].mxu1 }
 0x39e   :  { %v372_v39 = vadd.f32 %v368_v38, %v142_v37  ;;  %v1190_v40 = vpop.f32.mrb[3].mxu1 }
 0x3a0   :  { %1325 = vtanh.f32 %v372_v39  ;;  %v1083_v42 = vmul.f32 -1.442695, %v372_v39 }
 0x3a2   :  { %1327 = vpow2.f32 %v1083_v42 }
 0x3aa   :  { %v1326_v41 = vpop.eup %1325 }
 0x3ab   :  { %382 = vrot.lane.b32.xlu1 %v1326_v41, %s1432_s22 }
 0x3ac   :  { %v1328_v43 = vpop.eup %1327 }
 0x3ad   :  { %v376_v44 = vadd.f32 1.0, %v1328_v43 }
 0x3af   :  { %1329 = vrcp.f32 %v376_v44  ;;  %v157_v44 = vadd.f32 %v1537_v14, %v1592_v63  ;;  %v162_v63 = vadd.f32 %v1590_v62, %v1537_v14 }
 0x3b9   :  { %v1330_v45 = vpop.eup %1329 }
 0x3ba   :  { %v380_v48 = vmul.f32 %v1330_v45, %v286_v32 }
 0x41d   :  { %v383_v46 = vpop.permute.xlu1 %382 }
 0x41e   :  { %v385_v47 = vmul.f32 %v1330_v45, %v383_v46 }
 0x420   :  { %387 = vrot.lane.b32.xlu0 %v385_v47, %s1433_s25 }
 0x492   :  { %v388_v49 = vpop.permute.xlu0 %387 }
 0x493   :  { %v390_v50 = vadd.f32 %v388_v49, %v380_v48 }
 0x495   :  { %1331 = vtanh.f32 %v390_v50 }
 0x49f   :  { %v1332_v57 = vpop.eup %1331 }
 0x4a0   :  { %393 = vrot.lane.b32.xlu1 %v1332_v57, %s1432_s22 }
 0x512   :  { %v394_v58 = vpop.permute.xlu1 %393 }
 0x513   :  { %v396_v59 = vmul.f32 %v1330_v45, %v394_v58 }
 0x515   :  { %398 = vrot.lane.b32.xlu0 %v396_v59, %s1433_s25 }
 0x587   :  { %v399_v2 = vpop.permute.xlu0 %398 }
 0x588   :  { %1084 = vst.msk [vmem:[%s1720_s6 + $0x8] sm:$0xff] %vm190_vm2, %v399_v2  ;;  %1200 = vmatmul.mubr.msk.f32.vlgmr.msra.gmra.mrb[8].mxu0 %vm190_vm2, %v399_v2 }
 0x589   :  { %1287 = vmatpush3.bf16.msra.mxu0 %v1498_v7  ;;  %1221 = vmatprep.mubr.msk.f32.mxu0 %vm1430_vm1, %v1431_v10 }
 0x58a   :  { %1288 = vmatprep.subr.bf16.mxu0 %v1429_v3 }
 0x58d   :  { %1290 = vmatpush3.bf16.msra.mxu0 %v1513_v12 }
 0x58e   :  { %1297 = vmatprep.subr.bf16.mxu0 %v1429_v3 }
 0x65b   :  { %v473_v5 = vpop.f32.mrb[8].mxu0 }
 0x65c   :  { %v477_v6 = vadd.f32 %v473_v5, %v147_v4  ;;  %v1201_v8 = vpop.f32.mrb[9].mxu0 }
 0x65e   :  { %1333 = vtanh.f32 %v477_v6  ;;  %v1086_v11 = vmul.f32 -1.442695, %v477_v6 }
 0x660   :  { %1335 = vpow2.f32 %v1086_v11 }
 0x668   :  { %v1334_v9 = vpop.eup %1333 }
 0x669   :  { %487 = vrot.lane.b32.xlu1 %v1334_v9, %s1432_s22 }
 0x66a   :  { %v1336_v13 = vpop.eup %1335 }
 0x66b   :  { %v481_v15 = vadd.f32 1.0, %v1336_v13 }
 0x66d   :  { %1337 = vrcp.f32 %v481_v15 }
 0x677   :  { %v1338_v16 = vpop.eup %1337 }
 0x678   :  { %v485_v19 = vmul.f32 %v1338_v16, %v390_v50 }
 0x6db   :  { %v488_v17 = vpop.permute.xlu1 %487 }
 0x6dc   :  { %v490_v18 = vmul.f32 %v1338_v16, %v488_v17 }
 0x6de   :  { %492 = vrot.lane.b32.xlu0 %v490_v18, %s1433_s25 }
 0x750   :  { %v493_v20 = vpop.permute.xlu0 %492 }
 0x751   :  { %v495_v21 = vadd.f32 %v493_v20, %v485_v19  ;;  %v167_v19 = vadd.f32 %v1537_v14, %v1596_v1 }
 0x753   :  { %1339 = vtanh.f32 %v495_v21 }
 0x75d   :  { %v1340_v22 = vpop.eup %1339 }
 0x75e   :  { %498 = vrot.lane.b32.xlu1 %v1340_v22, %s1432_s22 }
 0x7d0   :  { %v499_v23 = vpop.permute.xlu1 %498 }
 0x7d1   :  { %v501_v24 = vmul.f32 %v1338_v16, %v499_v23 }
 0x7d3   :  { %503 = vrot.lane.b32.xlu0 %v501_v24, %s1433_s25 }
 0x845   :  { %v504_v25 = vpop.permute.xlu0 %503 }
 0x846   :  { %1087 = vst.msk [vmem:[%s1720_s6 + $0x10] sm:$0xff] %vm190_vm2, %v504_v25  ;;  %1211 = vmatmul.mubr.msk.f32.vlgmr.msra.gmra.mrb[4].mxu1 %vm190_vm2, %v504_v25 }
 0x847   :  { %1293 = vmatpush3.bf16.msra.mxu1 %v1498_v7  ;;  %1232 = vmatprep.mubr.msk.f32.mxu1 %vm1430_vm1, %v1431_v10 }
 0x848   :  { %1294 = vmatprep.subr.bf16.mxu1 %v1429_v3 }
 0x84b   :  { %1296 = vmatpush3.bf16.msra.mxu1 %v1513_v12 }
 0x84c   :  { %1303 = vmatprep.subr.bf16.mxu1 %v1429_v3 }
 0x919   :  { %v578_v27 = vpop.f32.mrb[4].mxu1 }
 0x91a   :  { %v582_v28 = vadd.f32 %v578_v27, %v152_v26  ;;  %v1212_v29 = vpop.f32.mrb[5].mxu1 }
 0x91c   :  { %1341 = vtanh.f32 %v582_v28  ;;  %v1089_v31 = vmul.f32 -1.442695, %v582_v28 }
 0x91e   :  { %1343 = vpow2.f32 %v1089_v31 }
 0x926   :  { %v1342_v30 = vpop.eup %1341 }
 0x927   :  { %592 = vrot.lane.b32.xlu1 %v1342_v30, %s1432_s22 }
 0x928   :  { %v1344_v32 = vpop.eup %1343 }
 0x929   :  { %v586_v33 = vadd.f32 1.0, %v1344_v32 }
 0x92b   :  { %1345 = vrcp.f32 %v586_v33 }
 0x935   :  { %v1346_v34 = vpop.eup %1345 }
 0x936   :  { %v590_v37 = vmul.f32 %v1346_v34, %v495_v21 }
 0x999   :  { %v593_v35 = vpop.permute.xlu1 %592 }
 0x99a   :  { %v595_v36 = vmul.f32 %v1346_v34, %v593_v35 }
 0x99c   :  { %597 = vrot.lane.b32.xlu0 %v595_v36, %s1433_s25  ;;  %v172_v36 = vadd.f32 %v1594_v0, %v1537_v14 }
 0xa0e   :  { %v598_v38 = vpop.permute.xlu0 %597 }
 0xa0f   :  { %v600_v39 = vadd.f32 %v598_v38, %v590_v37 }
 0xa11   :  { %1347 = vtanh.f32 %v600_v39 }
 0xa1b   :  { %v1348_v40 = vpop.eup %1347 }
 0xa1c   :  { %603 = vrot.lane.b32.xlu1 %v1348_v40, %s1432_s22 }
 0xa8e   :  { %v604_v41 = vpop.permute.xlu1 %603 }
 0xa8f   :  { %v606_v42 = vmul.f32 %v1346_v34, %v604_v41 }
 0xa91   :  { %608 = vrot.lane.b32.xlu0 %v606_v42, %s1433_s25 }
 0xb03   :  { %v609_v43 = vpop.permute.xlu0 %608 }
 0xb04   :  { %1090 = vst.msk [vmem:[%s1720_s6 + $0x18] sm:$0xff] %vm190_vm2, %v609_v43  ;;  %1222 = vmatmul.mubr.msk.f32.vlgmr.msra.gmra.mrb[10].mxu0 %vm190_vm2, %v609_v43 }
 0xb05   :  { %1299 = vmatpush3.bf16.msra.mxu0 %v1498_v7  ;;  %1243 = vmatprep.mubr.msk.f32.mxu0 %vm1430_vm1, %v1431_v10 }
 0xb06   :  { %1300 = vmatprep.subr.bf16.mxu0 %v1429_v3 }
 0xb09   :  { %1302 = vmatpush3.bf16.msra.mxu0 %v1513_v12 }
 0xbd7   :  { %v683_v45 = vpop.f32.mrb[10].mxu0 }
 0xbd8   :  { %v687_v46 = vadd.f32 %v683_v45, %v157_v44  ;;  %v1223_v47 = vpop.f32.mrb[11].mxu0 }
 0xbda   :  { %1349 = vtanh.f32 %v687_v46  ;;  %v1092_v49 = vmul.f32 -1.442695, %v687_v46 }
 0xbdc   :  { %1351 = vpow2.f32 %v1092_v49 }
 0xbe4   :  { %v1350_v48 = vpop.eup %1349 }
 0xbe5   :  { %697 = vrot.lane.b32.xlu1 %v1350_v48, %s1432_s22 }
 0xbe6   :  { %v1352_v50 = vpop.eup %1351 }
 0xbe7   :  { %v691_v51 = vadd.f32 1.0, %v1352_v50 }
 0xbe9   :  { %1353 = vrcp.f32 %v691_v51 }
 0xbf3   :  { %v1354_v52 = vpop.eup %1353 }
 0xbf4   :  { %v695_v55 = vmul.f32 %v1354_v52, %v600_v39 }
 0xc57   :  { %v698_v53 = vpop.permute.xlu1 %697 }
 0xc58   :  { %v700_v54 = vmul.f32 %v1354_v52, %v698_v53 }
 0xc5a   :  { %702 = vrot.lane.b32.xlu0 %v700_v54, %s1433_s25 }
 0xccc   :  { %v703_v56 = vpop.permute.xlu0 %702 }
 0xccd   :  { %v705_v57 = vadd.f32 %v703_v56, %v695_v55 }
 0xccf   :  { %1355 = vtanh.f32 %v705_v57 }
 0xcd9   :  { %v1356_v58 = vpop.eup %1355 }
 0xcda   :  { %708 = vrot.lane.b32.xlu1 %v1356_v58, %s1432_s22 }
 0xd4c   :  { %v709_v59 = vpop.permute.xlu1 %708 }
 0xd4d   :  { %v711_v60 = vmul.f32 %v1354_v52, %v709_v59 }
 0xd4f   :  { %713 = vrot.lane.b32.xlu0 %v711_v60, %s1433_s25 }
 0xdc1   :  { %v714_v61 = vpop.permute.xlu0 %713 }
 0xdc2   :  { %1093 = vst.msk [vmem:[%s1720_s6 + $0x20] sm:$0xff] %vm190_vm2, %v714_v61  ;;  %1233 = vmatmul.mubr.msk.f32.vlgmr.msra.gmra.mrb[6].mxu1 %vm190_vm2, %v714_v61 }
 0xdc3   :  { %1305 = vmatpush3.bf16.msra.mxu1 %v1498_v7  ;;  %1254 = vmatprep.mubr.msk.f32.mxu1 %vm1430_vm1, %v1431_v10 }
 0xdc4   :  { %1306 = vmatprep.subr.bf16.mxu1 %v1429_v3 }
 0xdc7   :  { %1308 = vmatpush3.bf16.msra.mxu1 %v1513_v12 }
 0xe95   :  { %v788_v2 = vpop.f32.mrb[6].mxu1 }
 0xe96   :  { %v792_v4 = vadd.f32 %v788_v2, %v162_v63  ;;  %v1234_v5 = vpop.f32.mrb[7].mxu1 }
 0xe98   :  { %1357 = vtanh.f32 %v792_v4  ;;  %v1095_v8 = vmul.f32 -1.442695, %v792_v4 }
 0xe9a   :  { %1359 = vpow2.f32 %v1095_v8 }
 0xea2   :  { %v1358_v6 = vpop.eup %1357 }
 0xea3   :  { %802 = vrot.lane.b32.xlu1 %v1358_v6, %s1432_s22 }
 0xea4   :  { %v1360_v7 = vpop.eup %1359 }
 0xea5   :  { %v796_v9 = vadd.f32 1.0, %v1360_v7 }
 0xea7   :  { %1361 = vrcp.f32 %v796_v9 }
 0xeb1   :  { %v1362_v10 = vpop.eup %1361 }
 0xeb2   :  { %v800_v12 = vmul.f32 %v1362_v10, %v705_v57 }
 0xf15   :  { %v803_v11 = vpop.permute.xlu1 %802 }
 0xf16   :  { %v805_v3 = vmul.f32 %v1362_v10, %v803_v11 }
 0xf18   :  { %807 = vrot.lane.b32.xlu0 %v805_v3, %s1433_s25 }
 0xf8a   :  { %v808_v13 = vpop.permute.xlu0 %807 }
 0xf8b   :  { %v810_v62 = vadd.f32 %v808_v13, %v800_v12 }
 0xf8d   :  { %1363 = vtanh.f32 %v810_v62 }
 0xf97   :  { %v1364_v15 = vpop.eup %1363 }
 0xf98   :  { %813 = vrot.lane.b32.xlu1 %v1364_v15, %s1432_s22 }
0x100a   :  { %v814_v16 = vpop.permute.xlu1 %813 }
0x100b   :  { %v816_v17 = vmul.f32 %v1362_v10, %v814_v16 }
0x100d   :  { %818 = vrot.lane.b32.xlu0 %v816_v17, %s1433_s25 }
0x107f   :  { %v819_v18 = vpop.permute.xlu0 %818 }
0x1080   :  { %1096 = vst.msk [vmem:[%s1720_s6 + $0x28] sm:$0xff] %vm190_vm2, %v819_v18  ;;  %1244 = vmatmul.mubr.msk.f32.vlgmr.msra.gmra.mrb[12].mxu0 %vm190_vm2, %v819_v18 }
0x1153   :  { %v893_v20 = vpop.f32.mrb[12].mxu0 }
0x1154   :  { %v897_v21 = vadd.f32 %v893_v20, %v167_v19  ;;  %v1245_v22 = vpop.f32.mrb[13].mxu0 }
0x1156   :  { %1365 = vtanh.f32 %v897_v21  ;;  %v1098_v24 = vmul.f32 -1.442695, %v897_v21 }
0x1158   :  { %1367 = vpow2.f32 %v1098_v24 }
0x1160   :  { %v1366_v23 = vpop.eup %1365 }
0x1161   :  { %907 = vrot.lane.b32.xlu1 %v1366_v23, %s1432_s22 }
0x1162   :  { %v1368_v25 = vpop.eup %1367 }
0x1163   :  { %v901_v26 = vadd.f32 1.0, %v1368_v25 }
0x1165   :  { %1369 = vrcp.f32 %v901_v26 }
0x116f   :  { %v1370_v27 = vpop.eup %1369 }
0x1170   :  { %v905_v30 = vmul.f32 %v1370_v27, %v810_v62 }
0x11d3   :  { %v908_v28 = vpop.permute.xlu1 %907 }
0x11d4   :  { %v910_v29 = vmul.f32 %v1370_v27, %v908_v28 }
0x11d6   :  { %912 = vrot.lane.b32.xlu0 %v910_v29, %s1433_s25 }
0x1248   :  { %v913_v31 = vpop.permute.xlu0 %912 }
0x1249   :  { %v915_v1 = vadd.f32 %v913_v31, %v905_v30 }
0x124b   :  { %1371 = vtanh.f32 %v915_v1 }
0x1255   :  { %v1372_v32 = vpop.eup %1371 }
0x1256   :  { %918 = vrot.lane.b32.xlu1 %v1372_v32, %s1432_s22 }
0x12c8   :  { %v919_v33 = vpop.permute.xlu1 %918 }
0x12c9   :  { %v921_v34 = vmul.f32 %v1370_v27, %v919_v33 }
0x12cb   :  { %923 = vrot.lane.b32.xlu0 %v921_v34, %s1433_s25 }
0x133d   :  { %v924_v35 = vpop.permute.xlu0 %923 }
0x133e   :  { %1099 = vst.msk [vmem:[%s1720_s6 + $0x30] sm:$0xff] %vm190_vm2, %v924_v35  ;;  %1255 = vmatmul.mubr.msk.f32.vlgmr.msra.gmra.mrb[8].mxu1 %vm190_vm2, %v924_v35 }
0x1411   :  { %v998_v37 = vpop.f32.mrb[8].mxu1 }
0x1412   :  { %v1002_v38 = vadd.f32 %v998_v37, %v172_v36  ;;  %v1256_v39 = vpop.f32.mrb[9].mxu1 }
0x1414   :  { %1373 = vtanh.f32 %v1002_v38  ;;  %v1101_v41 = vmul.f32 -1.442695, %v1002_v38 }
0x1416   :  { %1375 = vpow2.f32 %v1101_v41 }
0x141e   :  { %v1374_v40 = vpop.eup %1373 }
0x141f   :  { %1012 = vrot.lane.b32.xlu1 %v1374_v40, %s1432_s22 }
0x1420   :  { %v1376_v42 = vpop.eup %1375 }
0x1421   :  { %v1006_v43 = vadd.f32 1.0, %v1376_v42 }
0x1423   :  { %1377 = vrcp.f32 %v1006_v43 }
0x142d   :  { %v1378_v44 = vpop.eup %1377 }
0x142e   :  { %v1010_v47 = vmul.f32 %v1378_v44, %v915_v1 }
0x1491   :  { %v1013_v45 = vpop.permute.xlu1 %1012 }
0x1492   :  { %v1015_v46 = vmul.f32 %v1378_v44, %v1013_v45 }
0x1494   :  { %1017 = vrot.lane.b32.xlu0 %v1015_v46, %s1433_s25 }
0x1506   :  { %v1018_v48 = vpop.permute.xlu0 %1017 }
0x1507   :  { %v1020_v14 = vadd.f32 %v1018_v48, %v1010_v47 }
0x1509   :  { %1379 = vtanh.f32 %v1020_v14 }
0x1513   :  { %v1380_v0 = vpop.eup %1379 }
0x1514   :  { %1023 = vrot.lane.b32.xlu1 %v1380_v0, %s1432_s22 }
0x1518   :  { %1035 = vrot.lane.b32.xlu1 %v1020_v14, %s1434_s2 }
0x1586   :  { %v1024_v49 = vpop.permute.xlu1 %1023 }
0x1587   :  { %v1026_v50 = vmul.f32 %v1378_v44, %v1024_v49 }
0x1589   :  { %1028 = vrot.lane.b32.xlu0 %v1026_v50, %s1433_s25 }
0x158a   :  { %v1036_v51 = vpop.permute.xlu1 %1035 }
0x158b   :  { %1038 = vst.msk [vmem:[#allocation5] sm:$0xff] %vm190_vm2, %v1036_v51 }
0x158c   :  { %1392 = shalt.err (!%p1389_p4)
}
0x158d   :  { %s1393_s29 = scalar_lea.hbm %s1722_s8, 128 }
0x158e   :  { %p1394_p5 = scmp.ne.s32.totalorder %s1722_s8, %s1393_s29  ;;  %p1397_p6 = scmp.lt.u32.totalorder %s1393_s29, %s1722_s8 }
0x1590   :  { %p1399_p7 = pnand %p1397_p6, %p1394_p5 }
0x1592   :  { %1402 = shalt.err (!%p1399_p7)
}
0x1593   :  { %1060 = dma.vmem_to_hbm [thread:$0]  %s1058_s26, 128, %s1722_s8, [#allocation6]  }
0x1594   :  { %s1436_s13 = smov [#allocation3]  }
0x1595   :  { %s1047_s14 = sshll.u32 %s1436_s13, 4  ;;  %s1048_s14 = int_to_ptr.vmem [resolvable:$true] %s1047_s14 }
0x1596   :  { %s1403_s15 = scalar_lea.vmem %s1048_s14, 128  ;;  %p1408_p9 = scmp.lt.s32.totalorder %s1048_s14, %s1048_s14 }
0x1597   :  { %p1404_p8 = scmp.ne.s32.totalorder %s1048_s14, %s1403_s15  ;;  %p1409_p10 = scmp.lt.s32.totalorder %s1403_s15, %s1403_s15 }
0x1599   :  { %p1410_p11 = por %p1409_p10, %p1408_p9 }
0x159b   :  { %p1411_p12 = pnand %p1410_p11, %p1404_p8 }
0x15fb   :  { %v1029_v52 = vpop.permute.xlu0 %1028 }
0x15fc   :  { %1102 = vst.msk [vmem:[%s1720_s6 + $0x38] sm:$0xff] %vm190_vm2, %v1029_v52  ;;  %1033 = vst.msk [vmem:[#allocation3] sm:$0xff] %vm190_vm2, %v1029_v52 }
0x15fd   :  { %1414 = shalt.err (!%p1411_p12)
}
0x15fe   :  { %s1415_s17 = scalar_lea.hbm %s1721_s7, 128 }
0x15ff   :  { %p1416_p13 = scmp.ne.s32.totalorder %s1721_s7, %s1415_s17  ;;  %p1419_p0 = scmp.lt.u32.totalorder %s1415_s17, %s1721_s7 }
0x1601   :  { %p1421_p1 = pnand %p1419_p0, %p1416_p13 }
0x1603   :  { %1424 = shalt.err (!%p1421_p1)
}
0x1604   :  { %1050 = dma.vmem_to_hbm [thread:$0]  %s1048_s14, 128, %s1721_s7, [#allocation4]  }
0x1605   :  { %1425 = dma.done.wait [#allocation4], 128  }
0x1606   :  { %1426 = vsyncadd [#allocation4], 4294967168 }
0x1607   :  { %1427 = dma.done.wait [#allocation6], 128  }
0x1608   :  { %1428 = vsyncadd [#allocation6], 4294967168 }
0x1609   :  { %1069 = vsyncpa [#allocation4], 1 }
0x160a   :  { %1070 = vsyncpa [#allocation6], 1 }

</bundles_post_ra>
